<compile_context>
chip_gen: v6e
topology: v6e:2x2x1
jax: 0.10.0
libtpu: 0.0.40
codegen_flags: <defaults>
</compile_context>

<pallas_src>
import dataclasses
from functools import partial

import numpy as np
import jax
import jax.numpy as jnp
from jax import lax
from jax.experimental import pallas as pl
from jax.experimental.pallas import tpu as pltpu


# ---------------------------------------------------------------------------
# helpers
# ---------------------------------------------------------------------------
def _round_up(x, m):
    return ((x + m - 1) // m) * m


def _vmem_budget_bytes():
    """Per-generation scoped-VMEM budget for this kernel (leaves headroom).

    v7x has 64 MiB physical VMEM per TensorCore, v5e/v6e have 128 MiB.
    """
    try:
        kind = jax.devices()[0].device_kind.lower()
    except Exception:
        kind = ""
    if "v7" in kind or "7x" in kind:
        return 48 * 1024 * 1024
    return 96 * 1024 * 1024


def _choose_batch_tile(n_rows, x_row_bytes, out_row_bytes, budget_bytes):
    """Batch tile TN: multiple of 8, <=512, fits the VMEM budget (double-buffered
    x tile + out tile + accumulator), yields >=2 grid steps when the batch allows
    it (keeps both v7x TensorCores busy and pipelines the x DMA), and minimizes
    ragged last-block waste."""
    per_row = 2 * x_row_bytes + 3 * out_row_bytes
    cap = min(512, max(8, (budget_bytes // max(per_row, 1)) // 8 * 8))
    if n_rows > 8:
        cap = min(cap, max(8, _round_up(-(-n_rows // 2), 8)))   # >= 2 grid steps
    best, best_key = 8, None
    for t in range(8, cap + 1, 8):
        steps = -(-n_rows // t)
        waste = steps * t - n_rows
        key = (waste, steps)               # least waste, then biggest tile
        if best_key is None or key < best_key:
            best, best_key = t, key
    return best


# ---------------------------------------------------------------------------
# folded parameters
# ---------------------------------------------------------------------------
@dataclasses.dataclass(frozen=True)
class LRParams:
    w: jax.Array           # (Fp, Kp) weights (scaler folded in, NCHW feature order)
    b: jax.Array           # (1, Kp) f32 bias, -1e30 in padded class lanes
    n_features: int        # F (unpadded)
    n_classes: int         # K (unpadded)
    feature_tile: int      # == Fp when weights are VMEM-resident, else the F tile
    vmem_budget_bytes: int


def prepare_lr_weights(mean, scale, coef, intercept, input_chw=None,
                       weights_dtype=jnp.bfloat16, vmem_budget_bytes=None):
    """One-time folding of StandardScaler + LogisticRegression into (W, b).

    softmax(((x - m) / s) @ C^T + i) == softmax(x @ (C / s)^T + (i - (m/s) @ C^T))

    If input_chw=(C, H, W) is given, the feature axis of W is additionally
    permuted so the kernel can consume x flattened in *native NCHW order*
    (contiguous reshape, no NCHW->NHWC transpose pass over x).
    """
    mean = jnp.asarray(mean, jnp.float32)
    scale = jnp.asarray(scale, jnp.float32)
    coef = jnp.asarray(coef, jnp.float32)
    intercept = jnp.asarray(intercept, jnp.float32)
    K, F = coef.shape

    # sklearn's StandardScaler uses scale_ = 1 for zero-variance features.
    scale = jnp.where(scale == 0, 1.0, scale)
    inv_scale = 1.0 / scale

    w_fold = (coef * inv_scale[None, :]).T                         # (F, K), sklearn (NHWC) order
    b_fold = intercept - (mean * inv_scale) @ coef.T               # (K,)

    if input_chw is not None:
        C, H, W = input_chw
        assert C * H * W == F
        idx = jnp.arange(F)                                        # NCHW flat index
        c_i = idx // (H * W)
        hw = idx % (H * W)
        perm = (hw // W) * (W * C) + (hw % W) * C + c_i            # -> NHWC flat index
        w_fold = w_fold[perm]                                      # (F, K), NCHW order

    # Lane-dense class axis; -1e30 bias pads make padded lanes vanish in softmax.
    Kp = max(128, _round_up(K, 128))

    budget = vmem_budget_bytes if vmem_budget_bytes is not None else _vmem_budget_bytes()
    w_bytes = np.dtype(weights_dtype).itemsize

    # Resident (single-shot) if even a double-buffered copy of W fits half the budget.
    resident = 2 * F * Kp * w_bytes <= budget // 2
    if resident:
        tf = Fp = F
    else:
        # F-tiled reduction path: keep each (double-buffered) W tile <= budget/4.
        tf = max(128, ((budget // 4) // (2 * Kp * w_bytes)) // 128 * 128)
        if tf >= F:
            tf = Fp = F
        else:
            Fp = _round_up(F, tf)          # zero rows past F keep the reduction exact

    # Pad columns must be exactly zero (exact in bf16) for the -1e30 pad trick.
    w_p = jnp.zeros((Fp, Kp), jnp.float32).at[:F, :K].set(w_fold).astype(weights_dtype)
    b_p = jnp.full((1, Kp), -1e30, jnp.float32).at[0, :K].set(b_fold)

    return LRParams(w=w_p, b=b_p, n_features=F, n_classes=K,
                    feature_tile=tf, vmem_budget_bytes=budget)


# ---------------------------------------------------------------------------
# kernels
# ---------------------------------------------------------------------------
def _lr_softmax_resident_kernel(x_ref, w_ref, b_ref, o_ref):
    # x_ref: (TN, F)   w_ref: (F, Kp)   b_ref: (1, Kp) f32   o_ref: (TN, Kp) f32
    x = x_ref[...]
    if x.dtype != w_ref.dtype:
        x = x.astype(w_ref.dtype)              # f32 -> bf16 on the VPU; MXU runs bf16
    logits = jnp.dot(x, w_ref[...], preferred_element_type=jnp.float32) + b_ref[...]
    m = jnp.max(logits, axis=-1, keepdims=True)
    e = jnp.exp(logits - m)
    # Exact normalization: approx reciprocal broke the sum-to-1 invariant.
    o_ref[...] = e * (1.0 / jnp.sum(e, axis=-1, keepdims=True))


def _lr_softmax_ftiled_kernel(x_ref, w_ref, b_ref, o_ref, acc_ref, *, n_features, tf):
    # grid = (batch tiles, F tiles); acc_ref: (TN, Kp) f32 VMEM scratch.
    k = pl.program_id(1)

    @pl.when(k == 0)
    def _():
        acc_ref[...] = jnp.zeros_like(acc_ref)

    x = x_ref[...]
    if n_features % tf != 0:
        # Ragged last F block: its VMEM tail is undefined; W rows there are zero,
        # so zero the x tail too (0*0, never garbage*garbage).
        col = lax.broadcasted_iota(jnp.int32, x.shape, 1) + k * tf
        x = jnp.where(col < n_features, x, jnp.zeros_like(x))
    if x.dtype != w_ref.dtype:
        x = x.astype(w_ref.dtype)
    acc_ref[...] += jnp.dot(x, w_ref[...], preferred_element_type=jnp.float32)

    @pl.when(k == pl.num_programs(1) - 1)
    def _():
        logits = acc_ref[...] + b_ref[...]
        m = jnp.max(logits, axis=-1, keepdims=True)
        e = jnp.exp(logits - m)
        o_ref[...] = e * (1.0 / jnp.sum(e, axis=-1, keepdims=True))


# ---------------------------------------------------------------------------
# pallas_call wrappers
# ---------------------------------------------------------------------------
def _run_resident(x_flat, w, b, tn, budget):
    N, F = x_flat.shape
    Kp = w.shape[1]

    def build(single_buffer_weights):
        # Weights/bias are identical for every grid step: single-buffer them to
        # halve their VMEM footprint (matters on v7x's 64 MiB VMEM).
        kw = {"pipeline_mode": pl.Buffered(1)} if single_buffer_weights else {}
        return pl.pallas_call(
            _lr_softmax_resident_kernel,
            out_shape=jax.ShapeDtypeStruct((N, Kp), jnp.float32),
            grid=(pl.cdiv(N, tn),),
            in_specs=[
                pl.BlockSpec((tn, F), lambda i: (i, 0)),
                pl.BlockSpec((F, Kp), lambda i: (0, 0), **kw),
                pl.BlockSpec((1, Kp), lambda i: (0, 0), **kw),
            ],
            out_specs=pl.BlockSpec((tn, Kp), lambda i: (i, 0)),
            compiler_params=pltpu.CompilerParams(
                dimension_semantics=("parallel",),
                vmem_limit_bytes=budget),
        )

    try:
        return build(True)(x_flat, w, b)
    except Exception:
        # Older Pallas builds without per-spec pipeline_mode: default buffering.
        return build(False)(x_flat, w, b)


def _run_ftiled(x_flat, w, b, tn, tf, budget):
    N, F = x_flat.shape
    Fp, Kp = w.shape
    kernel = partial(_lr_softmax_ftiled_kernel, n_features=F, tf=tf)
    return pl.pallas_call(
        kernel,
        out_shape=jax.ShapeDtypeStruct((N, Kp), jnp.float32),
        grid=(pl.cdiv(N, tn), Fp // tf),
        in_specs=[
            pl.BlockSpec((tn, tf), lambda i, k: (i, k)),
            pl.BlockSpec((tf, Kp), lambda i, k: (k, 0)),
            pl.BlockSpec((1, Kp), lambda i, k: (0, 0)),
        ],
        out_specs=pl.BlockSpec((tn, Kp), lambda i, k: (i, 0)),
        scratch_shapes=[pltpu.VMEM((tn, Kp), jnp.float32)],
        compiler_params=pltpu.CompilerParams(
            dimension_semantics=("parallel", "arbitrary"),
            vmem_limit_bytes=budget),
    )(x_flat, w, b)


def lr_predict_proba(x_nchw, params: LRParams):
    """Pallas equivalent of LRWrapper.forward for a fitted model."""
    N = x_nchw.shape[0]
    F, K = params.n_features, params.n_classes
    Kp = params.w.shape[1]
    budget = params.vmem_budget_bytes

    # Contiguous NCHW flatten (no transpose, no padding, no extra HBM pass).
    x_flat = x_nchw.reshape(N, F)
    if x_flat.dtype not in (jnp.float32, jnp.bfloat16, jnp.float16):
        x_flat = x_flat.astype(jnp.float32)
    x_bytes = x_flat.dtype.itemsize
    w_bytes = params.w.dtype.itemsize

    if params.feature_tile == params.w.shape[0]:            # weights VMEM-resident
        w_budget = 2 * params.w.shape[0] * Kp * w_bytes      # conservative (double-buffer)
        tn = _choose_batch_tile(N, F * x_bytes, Kp * 4,
                                max(budget - w_budget, budget // 8))
        out = _run_resident(x_flat, params.w, params.b, tn, budget)
    else:                                                    # F-tiled reduction
        tf = params.feature_tile
        w_budget = 2 * tf * Kp * w_bytes
        tn = _choose_batch_tile(N, tf * x_bytes, Kp * 4,
                                max(budget - w_budget, budget // 8))
        out = _run_ftiled(x_flat, params.w, params.b, tn, tf, budget)

    return out[:, :K]


# ---------------------------------------------------------------------------
# references + self-test
# ---------------------------------------------------------------------------
def _reference_f32(x_nchw, mean, scale, coef, intercept):
    """Direct port of the PyTorch module's forward (preprocess -> scale -> LR)."""
    N, C, H, W = x_nchw.shape
    x_flat = jnp.transpose(x_nchw, (0, 2, 3, 1)).reshape(N, -1).astype(jnp.float32)
    xs = (x_flat - mean[None, :]) / scale[None, :]
    logits = jnp.dot(xs, coef.T, precision=lax.Precision.HIGHEST) + intercept[None, :]
    return jax.nn.softmax(logits, axis=-1)


def _reference_matched(x_nchw, params: LRParams):
    """Same folded / permuted / quantized weights as the kernel: isolates the
    kernel's layout & matmul correctness from weight-quantization error."""
    N = x_nchw.shape[0]
    F, K = params.n_features, params.n_classes
    w = params.w[:F, :K].astype(jnp.float32)
    b = params.b[0, :K]
    xq = x_nchw.reshape(N, F).astype(params.w.dtype).astype(jnp.float32)
    logits = jnp.dot(xq, w, precision=lax.Precision.HIGHEST) + b[None, :]
    return jax.nn.softmax(logits, axis=-1)


if __name__ == "__main__":
    key = jax.random.PRNGKey(0)
    k_x, k_m, k_s, k_w, k_b = jax.random.split(key, 5)

    # Small shapes consistent with the module: NCHW image batch, K=3 classes.
    N, C, H, W = 2, 4, 16, 16
    F = C * H * W
    K = 3

    x = jax.random.normal(k_x, (N, C, H, W), dtype=jnp.float32)

    # Deterministic synthetic "fitted" parameters (scaler + LR), not a checkpoint.
    # TODO(synk): LRWrapper.fit (sklearn lbfgs) and pickle state_dict are host-side
    # and not kernelized; only the fitted forward pass is implemented here.
    mean = jax.random.normal(k_m, (F,), dtype=jnp.float32) * 0.1
    scale = 0.5 + jax.nn.softplus(jax.random.normal(k_s, (F,), dtype=jnp.float32))
    coef = jax.random.normal(k_w, (K, F), dtype=jnp.float32) * 0.05
    intercept = jax.random.normal(k_b, (K,), dtype=jnp.float32) * 0.1

    ref = jax.block_until_ready(_reference_f32(x, mean, scale, coef, intercept))

    # --- f32 weights: tight check against the module's math ---
    params_f32 = prepare_lr_weights(mean, scale, coef, intercept, (C, H, W),
                                    weights_dtype=jnp.float32)
    probs_f32 = jax.block_until_ready(lr_predict_proba(x, params_f32))
    assert probs_f32.shape == (N, K) and probs_f32.dtype == jnp.float32
    assert jnp.allclose(jnp.sum(probs_f32, axis=-1), 1.0, atol=1e-3)
    assert jnp.allclose(probs_f32, ref, atol=1e-3, rtol=1e-3)

    # --- bf16 weights (default fast path): tight vs a quantization-matched
    #     reference, loose (quantization-level) vs the f32 reference ---
    params_bf16 = prepare_lr_weights(mean, scale, coef, intercept, (C, H, W))
    probs_bf16 = jax.block_until_ready(lr_predict_proba(x, params_bf16))
    assert probs_bf16.shape == (N, K) and probs_bf16.dtype == jnp.float32
    assert jnp.allclose(jnp.sum(probs_bf16, axis=-1), 1.0, atol=1e-3)
    assert jnp.allclose(probs_bf16, _reference_matched(x, params_bf16),
                        atol=1e-3, rtol=1e-3)
    assert jnp.allclose(probs_bf16, ref, atol=1e-2)   # bf16 weight quantization bound

    print("KERNEL_OK")
</pallas_src>

<mosaic_0001>
module attributes {stable_mosaic.version = 11 : i64} {
  func.func @_lr_softmax_resident_kernel(%arg0: i32, %arg1: memref<8x1024xf32, #tpu.memory_space<vmem>>, %arg2: memref<1024x128xf32, #tpu.memory_space<vmem>>, %arg3: memref<1x128xf32, #tpu.memory_space<vmem>>, %arg4: memref<8x128xf32, #tpu.memory_space<vmem>>) attributes {dimension_semantics = [#tpu.dimension_semantics<parallel>], iteration_bounds = array<i64: 1>, scalar_prefetch = 0 : i64, scratch_operands = 0 : i64, tpu.core_type = #tpu.core_type<tc>, window_params = [{transform_indices = @transform_0, window_bounds = array<i64: 8, 1024>}, {pipeline_mode = #tpu.pipeline_mode<synchronous>, transform_indices = @transform_1, window_bounds = array<i64: 1024, 128>}, {pipeline_mode = #tpu.pipeline_mode<synchronous>, transform_indices = @transform_2, window_bounds = array<i64: 1, 128>}, {transform_indices = @transform_3, window_bounds = array<i64: 8, 128>}]} {
    %c0 = arith.constant 0 : index
    %c0_0 = arith.constant 0 : index
    %0 = vector.load %arg1[%c0, %c0_0] : memref<8x1024xf32, #tpu.memory_space<vmem>>, vector<8x1024xf32>
    %c0_1 = arith.constant 0 : index
    %c0_2 = arith.constant 0 : index
    %1 = vector.load %arg2[%c0_1, %c0_2] : memref<1024x128xf32, #tpu.memory_space<vmem>>, vector<1024x128xf32>
    %cst = arith.constant dense<0.000000e+00> : vector<8x128xf32>
    %2 = tpu.matmul %0, %1, %cst {dimension_numbers = #tpu.dot_dimension_numbers<[1], [0], [0], [1], [0, 0, 1, 1], [], []>} : vector<8x1024xf32>, vector<1024x128xf32>, vector<8x128xf32> -> vector<8x128xf32>
    %c0_3 = arith.constant 0 : index
    %c0_4 = arith.constant 0 : index
    %3 = vector.load %arg3[%c0_3, %c0_4] : memref<1x128xf32, #tpu.memory_space<vmem>>, vector<1x128xf32>
    %4 = vector.broadcast %3 : vector<1x128xf32> to vector<8x128xf32>
    %5 = arith.addf %2, %4 : vector<8x128xf32>
    %cst_5 = arith.constant dense<0xFF800000> : vector<8xf32>
    %6 = vector.multi_reduction <maximumf>, %5, %cst_5 [1] : vector<8x128xf32> to vector<8xf32>
    %7 = vector.shape_cast %6 : vector<8xf32> to vector<8x1xf32>
    %8 = vector.broadcast %7 : vector<8x1xf32> to vector<8x128xf32>
    %9 = arith.subf %5, %8 : vector<8x128xf32>
    %10 = math.exp %9 : vector<8x128xf32>
    %cst_6 = arith.constant dense<0.000000e+00> : vector<8xf32>
    %11 = vector.multi_reduction <add>, %10, %cst_6 [1] : vector<8x128xf32> to vector<8xf32>
    %12 = vector.shape_cast %11 : vector<8xf32> to vector<8x1xf32>
    %cst_7 = arith.constant 1.000000e+00 : f32
    %13 = vector.broadcast %cst_7 : f32 to vector<8x1xf32>
    %14 = arith.divf %13, %12 : vector<8x1xf32>
    %15 = vector.broadcast %14 : vector<8x1xf32> to vector<8x128xf32>
    %16 = arith.mulf %10, %15 : vector<8x128xf32>
    %c0_8 = arith.constant 0 : index
    %c0_9 = arith.constant 0 : index
    %17 = vector.load %arg4[%c0_8, %c0_9] : memref<8x128xf32, #tpu.memory_space<vmem>>, vector<8x128xf32>
    tpu.vector_store %arg4[%c0_8, %c0_9], %16 {strides = array<i32>} : memref<8x128xf32, #tpu.memory_space<vmem>>, vector<8x128xf32>,
    return
  }
  func.func @transform_0(%arg0: i32) -> (i32, i32) {
    %c0_i32 = arith.constant 0 : i32
    %c0_i32_0 = arith.constant 0 : i32
    return %arg0, %c0_i32 : i32, i32
  }
  func.func @transform_1(%arg0: i32) -> (i32, i32) {
    %c0_i32 = arith.constant 0 : i32
    %c0_i32_0 = arith.constant 0 : i32
    %c0_i32_1 = arith.constant 0 : i32
    return %c0_i32, %c0_i32_0 : i32, i32
  }
  func.func @transform_2(%arg0: i32) -> (i32, i32) {
    %c0_i32 = arith.constant 0 : i32
    %c0_i32_0 = arith.constant 0 : i32
    %c0_i32_1 = arith.constant 0 : i32
    return %c0_i32, %c0_i32_0 : i32, i32
  }
  func.func @transform_3(%arg0: i32) -> (i32, i32) {
    %c0_i32 = arith.constant 0 : i32
    %c0_i32_0 = arith.constant 0 : i32
    return %arg0, %c0_i32 : i32, i32
  }
}

module attributes {stable_mosaic.version = 11 : i64} {
  func.func @_lr_softmax_resident_kernel(%arg0: i32, %arg1: memref<8x1024xf32, #tpu.memory_space<vmem>>, %arg2: memref<1024x128xf32, #tpu.memory_space<vmem>>, %arg3: memref<1x128xf32, #tpu.memory_space<vmem>>, %arg4: memref<8x128xf32, #tpu.memory_space<vmem>>) attributes {dimension_semantics = [#tpu.dimension_semantics<parallel>], iteration_bounds = array<i64: 1>, scalar_prefetch = 0 : i64, scratch_operands = 0 : i64, tpu.core_type = #tpu.core_type<tc>, window_params = [{transform_indices = @transform_0, window_bounds = array<i64: 8, 1024>}, {pipeline_mode = #tpu.pipeline_mode<synchronous>, transform_indices = @transform_1, window_bounds = array<i64: 1024, 128>}, {pipeline_mode = #tpu.pipeline_mode<synchronous>, transform_indices = @transform_2, window_bounds = array<i64: 1, 128>}, {transform_indices = @transform_3, window_bounds = array<i64: 8, 128>}]} {
    %c0 = arith.constant 0 : index
    %c0_0 = arith.constant 0 : index
    %0 = vector.load %arg1[%c0, %c0_0] : memref<8x1024xf32, #tpu.memory_space<vmem>>, vector<8x1024xf32>
    %c0_1 = arith.constant 0 : index
    %c0_2 = arith.constant 0 : index
    %1 = vector.load %arg2[%c0_1, %c0_2] : memref<1024x128xf32, #tpu.memory_space<vmem>>, vector<1024x128xf32>
    %cst = arith.constant dense<0.000000e+00> : vector<8x128xf32>
    %2 = tpu.matmul %0, %1, %cst {dimension_numbers = #tpu.dot_dimension_numbers<[1], [0], [0], [1], [0, 0, 1, 1], [], []>} : vector<8x1024xf32>, vector<1024x128xf32>, vector<8x128xf32> -> vector<8x128xf32>
    %c0_3 = arith.constant 0 : index
    %c0_4 = arith.constant 0 : index
    %3 = vector.load %arg3[%c0_3, %c0_4] : memref<1x128xf32, #tpu.memory_space<vmem>>, vector<1x128xf32>
    %4 = vector.broadcast %3 : vector<1x128xf32> to vector<8x128xf32>
    %5 = arith.addf %2, %4 : vector<8x128xf32>
    %cst_5 = arith.constant dense<0xFF800000> : vector<8xf32>
    %6 = vector.multi_reduction <maximumf>, %5, %cst_5 [1] : vector<8x128xf32> to vector<8xf32>
    %7 = vector.shape_cast %6 : vector<8xf32> to vector<8x1xf32>
    %8 = vector.broadcast %7 : vector<8x1xf32> to vector<8x128xf32>
    %9 = arith.subf %5, %8 : vector<8x128xf32>
    %10 = math.exp %9 : vector<8x128xf32>
    %cst_6 = arith.constant dense<0.000000e+00> : vector<8xf32>
    %11 = vector.multi_reduction <add>, %10, %cst_6 [1] : vector<8x128xf32> to vector<8xf32>
    %12 = vector.shape_cast %11 : vector<8xf32> to vector<8x1xf32>
    %cst_7 = arith.constant 1.000000e+00 : f32
    %13 = vector.broadcast %cst_7 : f32 to vector<8x1xf32>
    %14 = arith.divf %13, %12 : vector<8x1xf32>
    %15 = vector.broadcast %14 : vector<8x1xf32> to vector<8x128xf32>
    %16 = arith.mulf %10, %15 : vector<8x128xf32>
    %c0_8 = arith.constant 0 : index
    %c0_9 = arith.constant 0 : index
    %17 = vector.load %arg4[%c0_8, %c0_9] : memref<8x128xf32, #tpu.memory_space<vmem>>, vector<8x128xf32>
    tpu.vector_store %arg4[%c0_8, %c0_9], %16 {strides = array<i32>} : memref<8x128xf32, #tpu.memory_space<vmem>>, vector<8x128xf32>,
    return
  }
  func.func @transform_0(%arg0: i32) -> (i32, i32) {
    %c0_i32 = arith.constant 0 : i32
    %c0_i32_0 = arith.constant 0 : i32
    return %arg0, %c0_i32 : i32, i32
  }
  func.func @transform_1(%arg0: i32) -> (i32, i32) {
    %c0_i32 = arith.constant 0 : i32
    %c0_i32_0 = arith.constant 0 : i32
    %c0_i32_1 = arith.constant 0 : i32
    return %c0_i32, %c0_i32_0 : i32, i32
  }
  func.func @transform_2(%arg0: i32) -> (i32, i32) {
    %c0_i32 = arith.constant 0 : i32
    %c0_i32_0 = arith.constant 0 : i32
    %c0_i32_1 = arith.constant 0 : i32
    return %c0_i32, %c0_i32_0 : i32, i32
  }
  func.func @transform_3(%arg0: i32) -> (i32, i32) {
    %c0_i32 = arith.constant 0 : i32
    %c0_i32_0 = arith.constant 0 : i32
    return %arg0, %c0_i32 : i32, i32
  }
}

</mosaic_0001>

<bundles_post_ra>
// kernel: tpu_custom_call.1
= control target key start
LH: loop header
LB: loop body
LE: loop exit
PB: predicated region body
PF: predicated region fallthrough
CT: control target
= control target key end

     0   :  { %8 = vsyncpa [#allocation3], 0  ;;  %s868_s0 = inlined_call_operand.hbm [shape: f32[2,1024], index: 0, kind: input, shape index: {}]   ;;  %s869_s1 = inlined_call_operand.hbm [shape: f32[1024,128], index: 1, kind: input, shape index: {}]   ;;  %s870_s2 = inlined_call_operand.vmem [shape: f32[1,128], index: 2, kind: input, shape index: {}]   ;;  %s871_s3 = inlined_call_operand.hbm [shape: f32[2,128], index: 3, kind: output, shape index: {}]  }
   0x1   :  { %9 = vsyncpa [#allocation6], 0 }
   0x2   :  { %10 = vsyncpa [#allocation4], 0 }
   0x3   :  { %15 = vsyncadd [#allocation3], 768  ;;  %s816_s12 = smov [#allocation2]  }
   0x4   :  { %s16_s13 = sshll.u32 %s816_s12, 4  ;;  %s17_s13 = int_to_ptr.vmem [resolvable:$true] %s16_s13 }
   0x5   :  { %s758_s14 = scalar_lea.vmem %s17_s13, 256  ;;  %s762_s15 = scalar_lea.vmem %s17_s13, 1024 }
   0x6   :  { %p759_p0 = scmp.ne.s32.totalorder %s17_s13, %s758_s14  ;;  %p763_p1 = scmp.lt.s32.totalorder %s17_s13, %s17_s13 }
   0x7   :  { %p764_p2 = scmp.lt.s32.totalorder %s762_s15, %s758_s14 }
   0x9   :  { %p765_p3 = por %p764_p2, %p763_p1 }
   0xb   :  { %p766_p4 = pnand %p765_p3, %p759_p0 }
   0xd   :  { %769 = shalt.err (!%p766_p4)
}
   0xe   :  { %s817_s16 = smov 256   ;;  %s818_s17 = smov 16  }
   0xf   :  { %22 = dma.hbm_to_vmem [thread:$0]  %s868_s0, 256, %s17_s13, [#allocation3], %s817_s16, %s817_s16, %s818_s17  }
  0x10   :  { %s819_s20 = smov [#allocation5]  }
  0x11   :  { %s28_s21 = sshll.u32 %s819_s20, 4  ;;  %s29_s21 = int_to_ptr.vmem [resolvable:$true] %s28_s21 }
  0x12   :  { %s778_s22 = scalar_lea.vmem %s29_s21, 16384  ;;  %p783_p6 = scmp.lt.s32.totalorder %s29_s21, %s29_s21 }
  0x13   :  { %p779_p5 = scmp.ne.s32.totalorder %s29_s21, %s778_s22  ;;  %p784_p7 = scmp.lt.s32.totalorder %s778_s22, %s778_s22 }
  0x15   :  { %p785_p8 = por %p784_p7, %p783_p6 }
  0x17   :  { %p786_p9 = pnand %p785_p8, %p779_p5 }
  0x19   :  { %789 = shalt.err (!%p786_p9)
}
  0x1a   :  { %s820_s23 = smov 128   ;;  %s821_s24 = smov 8  }
  0x1b   :  { %34 = dma.hbm_to_vmem [thread:$0]  %s869_s1, 16384, %s29_s21, [#allocation6], %s820_s23, %s820_s23, %s821_s24  }
  0x1c   :  { %810 = dma.done.wait [#allocation3], 1024  }
  0x1d   :  { %811 = vsyncadd [#allocation3], 4294966272 }
  0x1e   :  { %812 = dma.done.wait [#allocation6], 16384  }
  0x1f   :  { %813 = vsyncadd [#allocation6], 4294950912  ;;  %v82_v0 = vld [vmem:[#allocation5 + $0xf8] sm:$0xff]  ;;  %v81_v4 = vld [vmem:[#allocation5 + $0xf0] sm:$0xff]  ;;  %v822_v30 = vmov 1983009808   ;;  %v201_v32 = vlaneseq }
  0x20   :  { %v114_v1 = vld [vmem:[#allocation5 + $0x1f8] sm:$0xff]  ;;  %584 = vmatprep.subr.mxu0 %v82_v0  ;;  %v113_v5 = vld [vmem:[#allocation5 + $0x1f0] sm:$0xff]  ;;  %v80_v8 = vld [vmem:[#allocation5 + $0xe8] sm:$0xff]  ;;  %v199_v31 = vunpack.c.l.s4 %v822_v30 }
  0x21   :  { %v66_v2 = vld [vmem:[#allocation5 + $0x78] sm:$0xff]  ;;  %619 = vmatprep.subr.mxu1 %v114_v1  ;;  %v65_v6 = vld [vmem:[#allocation5 + $0x70] sm:$0xff]  ;;  %v112_v9 = vld [vmem:[#allocation5 + $0x1e8] sm:$0xff]  ;;  %v202_v42 = vshrl.u32 %v201_v32, 7 }
  0x22   :  { %v98_v3 = vld [vmem:[#allocation5 + $0x178] sm:$0xff]  ;;  %585 = vmatpush3.msra.mxu0 %v66_v2  ;;  %v97_v7 = vld [vmem:[#allocation5 + $0x170] sm:$0xff]  ;;  %v64_v10 = vld [vmem:[#allocation5 + $0x68] sm:$0xff]  ;;  %v200_v41 = vunpack.c.0.s8 %v199_v31 }
  0x23   :  { %620 = vmatpush3.msra.mxu1 %v98_v3  ;;  %586 = vmatprep.subr.mxu0 %v81_v4  ;;  %v96_v11 = vld [vmem:[#allocation5 + $0x168] sm:$0xff]  ;;  %v79_v12 = vld [vmem:[#allocation5 + $0xe0] sm:$0xff]  ;;  %v78_v16 = vld [vmem:[#allocation5 + $0xd8] sm:$0xff] }
  0x24   :  { %621 = vmatprep.subr.mxu1 %v113_v5  ;;  %587 = vmatpush3.msra.mxu0 %v65_v6  ;;  %v111_v13 = vld [vmem:[#allocation5 + $0x1e0] sm:$0xff]  ;;  %v110_v17 = vld [vmem:[#allocation5 + $0x1d8] sm:$0xff]  ;;  %v77_v20 = vld [vmem:[#allocation5 + $0xd0] sm:$0xff]  ;;  %v852_v55 = vsub.s32 %v200_v41, %v202_v42 }
  0x25   :  { %622 = vmatpush3.msra.mxu1 %v97_v7  ;;  %588 = vmatprep.subr.mxu0 %v80_v8  ;;  %v63_v14 = vld [vmem:[#allocation5 + $0x60] sm:$0xff]  ;;  %v62_v18 = vld [vmem:[#allocation5 + $0x58] sm:$0xff]  ;;  %v109_v21 = vld [vmem:[#allocation5 + $0x1d0] sm:$0xff] }
  0x26   :  { %623 = vmatprep.subr.mxu1 %v112_v9  ;;  %v95_v15 = vld [vmem:[#allocation5 + $0x160] sm:$0xff]  ;;  %589 = vmatpush3.msra.mxu0 %v64_v10  ;;  %v94_v19 = vld [vmem:[#allocation5 + $0x158] sm:$0xff]  ;;  %v61_v22 = vld [vmem:[#allocation5 + $0x50] sm:$0xff] }
  0x27   :  { %624 = vmatpush3.msra.mxu1 %v96_v11  ;;  %590 = vmatprep.subr.mxu0 %v79_v12  ;;  %v93_v23 = vld [vmem:[#allocation5 + $0x150] sm:$0xff]  ;;  %v76_v24 = vld [vmem:[#allocation5 + $0xc8] sm:$0xff]  ;;  %v75_v28 = vld [vmem:[#allocation5 + $0xc0] sm:$0xff] }
  0x28   :  { %625 = vmatprep.subr.mxu1 %v111_v13  ;;  %591 = vmatpush3.msra.mxu0 %v63_v14  ;;  %v108_v25 = vld [vmem:[#allocation5 + $0x1c8] sm:$0xff]  ;;  %v107_v29 = vld [vmem:[#allocation5 + $0x1c0] sm:$0xff]  ;;  %v74_v35 = vld [vmem:[#allocation5 + $0xb8] sm:$0xff] }
  0x29   :  { %626 = vmatpush3.msra.mxu1 %v95_v15  ;;  %592 = vmatprep.subr.mxu0 %v78_v16  ;;  %v60_v26 = vld [vmem:[#allocation5 + $0x48] sm:$0xff]  ;;  %v59_v33 = vld [vmem:[#allocation5 + $0x40] sm:$0xff]  ;;  %v106_v36 = vld [vmem:[#allocation5 + $0x1b8] sm:$0xff] }
  0x2a   :  { %627 = vmatprep.subr.mxu1 %v110_v17  ;;  %593 = vmatpush3.msra.mxu0 %v62_v18  ;;  %v92_v27 = vld [vmem:[#allocation5 + $0x148] sm:$0xff]  ;;  %v91_v34 = vld [vmem:[#allocation5 + $0x140] sm:$0xff]  ;;  %v58_v37 = vld [vmem:[#allocation5 + $0x38] sm:$0xff] }
  0x2b   :  { %628 = vmatpush3.msra.mxu1 %v94_v19  ;;  %594 = vmatprep.subr.mxu0 %v77_v20  ;;  %v90_v38 = vld [vmem:[#allocation5 + $0x138] sm:$0xff]  ;;  %v73_v39 = vld [vmem:[#allocation5 + $0xb0] sm:$0xff]  ;;  %v72_v45 = vld [vmem:[#allocation5 + $0xa8] sm:$0xff] }
  0x2c   :  { %629 = vmatprep.subr.mxu1 %v109_v21  ;;  %595 = vmatpush3.msra.mxu0 %v61_v22  ;;  %v105_v40 = vld [vmem:[#allocation5 + $0x1b0] sm:$0xff]  ;;  %v104_v46 = vld [vmem:[#allocation5 + $0x1a8] sm:$0xff]  ;;  %v71_v49 = vld [vmem:[#allocation5 + $0xa0] sm:$0xff] }
  0x2d   :  { %630 = vmatpush3.msra.mxu1 %v93_v23  ;;  %596 = vmatprep.subr.mxu0 %v76_v24  ;;  %v57_v43 = vld [vmem:[#allocation5 + $0x30] sm:$0xff]  ;;  %v56_v47 = vld [vmem:[#allocation5 + $0x28] sm:$0xff]  ;;  %v103_v50 = vld [vmem:[#allocation5 + $0x1a0] sm:$0xff] }
  0x2e   :  { %631 = vmatprep.subr.mxu1 %v108_v25  ;;  %597 = vmatpush3.msra.mxu0 %v60_v26  ;;  %v89_v44 = vld [vmem:[#allocation5 + $0x130] sm:$0xff]  ;;  %v88_v48 = vld [vmem:[#allocation5 + $0x128] sm:$0xff]  ;;  %v55_v51 = vld [vmem:[#allocation5 + $0x20] sm:$0xff] }
  0x2f   :  { %632 = vmatpush3.msra.mxu1 %v92_v27  ;;  %598 = vmatprep.subr.mxu0 %v75_v28  ;;  %v87_v52 = vld [vmem:[#allocation5 + $0x120] sm:$0xff]  ;;  %v70_v53 = vld [vmem:[#allocation5 + $0x98] sm:$0xff]  ;;  %v69_v62 = vld [vmem:[#allocation5 + $0x90] sm:$0xff] }
  0x30   :  { %633 = vmatprep.subr.mxu1 %v107_v29  ;;  %599 = vmatpush3.msra.mxu0 %v59_v33  ;;  %v102_v54 = vld [vmem:[#allocation5 + $0x198] sm:$0xff]  ;;  %v734_v57 = vld [vmem:[#allocation2] ss:$16 sps:$4 sm:$0xff]   ;;  %v738_v60 = vld [vmem:[#allocation2 + $0x4] ss:$16 sps:$4 sm:$0xff]  }
  0x31   :  { %634 = vmatpush3.msra.mxu1 %v91_v34  ;;  %600 = vmatprep.subr.mxu0 %v74_v35  ;;  %v54_v56 = vld [vmem:[#allocation5 + $0x18] sm:$0xff]  ;;  %v736_v58 = vld [vmem:[#allocation2 + $0x20] ss:$16 sps:$4 sm:$0xff]   ;;  %v739_v61 = vld [vmem:[#allocation2 + $0x24] ss:$16 sps:$4 sm:$0xff]   ;;  %v204_v0 = vrot.slane %v734_v57, %v852_v55  ;;  %v211_v6 = vrot.slane %v738_v60, %v852_v55 }
  0x32   :  { %635 = vmatprep.subr.mxu1 %v106_v36  ;;  %601 = vmatpush3.msra.mxu0 %v58_v37  ;;  %v86_v59 = vld [vmem:[#allocation5 + $0x118] sm:$0xff]  ;;  %v101_v63 = vld [vmem:[#allocation5 + $0x190] sm:$0xff]  ;;  %v218_v1 = vrot.slane %v736_v58, %v852_v55  ;;  %v68_v4 = vld [vmem:[#allocation5 + $0x88] sm:$0xff]  ;;  %v225_v7 = vrot.slane %v739_v61, %v852_v55 }
  0x33   :  { %636 = vmatpush3.msra.mxu1 %v90_v38  ;;  %602 = vmatprep.subr.mxu0 %v73_v39  ;;  %v53_v2 = vld [vmem:[#allocation5 + $0x10] sm:$0xff]  ;;  %v100_v5 = vld [vmem:[#allocation5 + $0x188] sm:$0xff]  ;;  %v67_v10 = vld [vmem:[#allocation5 + $0x80] sm:$0xff] }
  0x34   :  { %637 = vmatprep.subr.mxu1 %v105_v40  ;;  %603 = vmatpush3.msra.mxu0 %v57_v43  ;;  %v85_v3 = vld [vmem:[#allocation5 + $0x110] sm:$0xff]  ;;  %v52_v8 = vld [vmem:[#allocation5 + $0x8] sm:$0xff]  ;;  %v99_v11 = vld [vmem:[#allocation5 + $0x180] sm:$0xff]  ;;  %v227_v12 = vcombine.high %v204_v0, %v218_v1  ;;  %v226_v14 = vcombine.low %v204_v0, %v218_v1  ;;  %v229_v16 = vcombine.high %v211_v6, %v225_v7 }
  0x35   :  { %638 = vmatpush3.msra.mxu1 %v89_v44  ;;  %604 = vmatprep.subr.mxu0 %v72_v45  ;;  %v84_v9 = vld [vmem:[#allocation5 + $0x108] sm:$0xff]  ;;  %v51_v13 = vld [vmem:[#allocation5] sm:$0xff]  ;;  %v146_v17 = vld [vmem:[#allocation5 + $0x2f8] sm:$0xff]  ;;  %v228_v18 = vcombine.low %v211_v6, %v225_v7 }
  0x36   :  { %639 = vmatprep.subr.mxu1 %v104_v46  ;;  %605 = vmatpush3.msra.mxu0 %v56_v47  ;;  %v83_v15 = vld [vmem:[#allocation5 + $0x100] sm:$0xff]  ;;  %v178_v19 = vld [vmem:[#allocation5 + $0x3f8] sm:$0xff]  ;;  %v145_v22 = vld [vmem:[#allocation5 + $0x2f0] sm:$0xff] }
  0x37   :  { %640 = vmatpush3.msra.mxu1 %v88_v48  ;;  %606 = vmatprep.subr.mxu0 %v71_v49  ;;  %v130_v20 = vld [vmem:[#allocation5 + $0x278] sm:$0xff]  ;;  %v177_v23 = vld [vmem:[#allocation5 + $0x3f0] sm:$0xff]  ;;  %v144_v26 = vld [vmem:[#allocation5 + $0x2e8] sm:$0xff] }
  0x38   :  { %641 = vmatprep.subr.mxu1 %v103_v50  ;;  %607 = vmatpush3.msra.mxu0 %v55_v51  ;;  %v162_v21 = vld [vmem:[#allocation5 + $0x378] sm:$0xff]  ;;  %v129_v24 = vld [vmem:[#allocation5 + $0x270] sm:$0xff]  ;;  %v176_v27 = vld [vmem:[#allocation5 + $0x3e8] sm:$0xff] }
  0x39   :  { %642 = vmatpush3.msra.mxu1 %v87_v52  ;;  %608 = vmatprep.subr.mxu0 %v70_v53  ;;  %v161_v25 = vld [vmem:[#allocation5 + $0x370] sm:$0xff]  ;;  %v128_v28 = vld [vmem:[#allocation5 + $0x268] sm:$0xff]  ;;  %v143_v30 = vld [vmem:[#allocation5 + $0x2e0] sm:$0xff] }
  0x3a   :  { %643 = vmatprep.subr.mxu1 %v102_v54  ;;  %609 = vmatpush3.msra.mxu0 %v54_v56  ;;  %v160_v29 = vld [vmem:[#allocation5 + $0x368] sm:$0xff]  ;;  %v175_v31 = vld [vmem:[#allocation5 + $0x3e0] sm:$0xff]  ;;  %v142_v34 = vld [vmem:[#allocation5 + $0x2d8] sm:$0xff] }
  0x3b   :  { %644 = vmatpush3.msra.mxu1 %v86_v59  ;;  %610 = vmatprep.subr.mxu0 %v69_v62  ;;  %v127_v32 = vld [vmem:[#allocation5 + $0x260] sm:$0xff]  ;;  %v174_v35 = vld [vmem:[#allocation5 + $0x3d8] sm:$0xff]  ;;  %v141_v38 = vld [vmem:[#allocation5 + $0x2d0] sm:$0xff] }
  0x3c   :  { %645 = vmatprep.subr.mxu1 %v101_v63  ;;  %611 = vmatpush3.msra.mxu0 %v53_v2  ;;  %v159_v33 = vld [vmem:[#allocation5 + $0x360] sm:$0xff]  ;;  %v126_v36 = vld [vmem:[#allocation5 + $0x258] sm:$0xff]  ;;  %v173_v39 = vld [vmem:[#allocation5 + $0x3d0] sm:$0xff] }
  0x3d   :  { %646 = vmatpush3.msra.mxu1 %v85_v3  ;;  %612 = vmatprep.subr.mxu0 %v68_v4  ;;  %v158_v37 = vld [vmem:[#allocation5 + $0x358] sm:$0xff]  ;;  %v125_v40 = vld [vmem:[#allocation5 + $0x250] sm:$0xff]  ;;  %v140_v42 = vld [vmem:[#allocation5 + $0x2c8] sm:$0xff] }
  0x3e   :  { %647 = vmatprep.subr.mxu1 %v100_v5  ;;  %613 = vmatpush3.msra.mxu0 %v52_v8  ;;  %v157_v41 = vld [vmem:[#allocation5 + $0x350] sm:$0xff]  ;;  %v172_v43 = vld [vmem:[#allocation5 + $0x3c8] sm:$0xff]  ;;  %v139_v46 = vld [vmem:[#allocation5 + $0x2c0] sm:$0xff] }
  0x3f   :  { %648 = vmatpush3.msra.mxu1 %v84_v9  ;;  %614 = vmatprep.subr.mxu0 %v67_v10  ;;  %v124_v44 = vld [vmem:[#allocation5 + $0x248] sm:$0xff]  ;;  %v171_v47 = vld [vmem:[#allocation5 + $0x3c0] sm:$0xff]  ;;  %v138_v50 = vld [vmem:[#allocation5 + $0x2b8] sm:$0xff] }
  0x40   :  { %649 = vmatprep.subr.mxu1 %v99_v11  ;;  %615 = vmatpush3.msra.mxu0 %v51_v13  ;;  %v156_v45 = vld [vmem:[#allocation5 + $0x348] sm:$0xff]  ;;  %v123_v48 = vld [vmem:[#allocation5 + $0x240] sm:$0xff]  ;;  %v170_v51 = vld [vmem:[#allocation5 + $0x3b8] sm:$0xff] }
  0x41   :  { %338 = vmatprep.mubr.f32.mxu0 %v227_v12  ;;  %650 = vmatpush3.msra.mxu1 %v83_v15  ;;  %v155_v49 = vld [vmem:[#allocation5 + $0x340] sm:$0xff]  ;;  %v122_v52 = vld [vmem:[#allocation5 + $0x238] sm:$0xff]  ;;  %v137_v54 = vld [vmem:[#allocation5 + $0x2b0] sm:$0xff] }
  0x42   :  { %339 = vmatmul.mubr.f32.vlgmr.msra.gmra.mxu0 %v226_v14  ;;  %408 = vmatprep.mubr.f32.mxu1 %v229_v16  ;;  %v154_v53 = vld [vmem:[#allocation5 + $0x338] sm:$0xff]  ;;  %v169_v56 = vld [vmem:[#allocation5 + $0x3b0] sm:$0xff]  ;;  %v136_v59 = vld [vmem:[#allocation5 + $0x2a8] sm:$0xff] }
  0x43   :  { %654 = vmatprep.subr.mxu0 %v146_v17  ;;  %689 = vmatprep.subr.mxu1 %v178_v19  ;;  %v121_v57 = vld [vmem:[#allocation5 + $0x230] sm:$0xff]  ;;  %v168_v60 = vld [vmem:[#allocation5 + $0x3a8] sm:$0xff]  ;;  %v135_v63 = vld [vmem:[#allocation5 + $0x2a0] sm:$0xff] }
  0x44   :  { %409 = vmatmul.mubr.f32.vlgmr.msra.gmra.mxu1 %v228_v18  ;;  %655 = vmatpush3.msra.mxu0 %v130_v20  ;;  %v153_v58 = vld [vmem:[#allocation5 + $0x330] sm:$0xff]  ;;  %v120_v61 = vld [vmem:[#allocation5 + $0x228] sm:$0xff]  ;;  %v167_v0 = vld [vmem:[#allocation5 + $0x3a0] sm:$0xff] }
  0x45   :  { %690 = vmatpush3.msra.mxu1 %v162_v21  ;;  %656 = vmatprep.subr.mxu0 %v145_v22  ;;  %v152_v62 = vld [vmem:[#allocation5 + $0x328] sm:$0xff]  ;;  %v119_v1 = vld [vmem:[#allocation5 + $0x220] sm:$0xff]  ;;  %v134_v7 = vld [vmem:[#allocation5 + $0x298] sm:$0xff] }
  0x46   :  { %691 = vmatprep.subr.mxu1 %v177_v23  ;;  %657 = vmatpush3.msra.mxu0 %v129_v24  ;;  %v740_v2 = vld [vmem:[#allocation2 + $0x8] ss:$16 sps:$4 sm:$0xff]   ;;  %v151_v4 = vld [vmem:[#allocation5 + $0x320] sm:$0xff]  ;;  %v744_v5 = vld [vmem:[#allocation2 + $0xc] ss:$16 sps:$4 sm:$0xff]  }
  0x47   :  { %692 = vmatpush3.msra.mxu1 %v161_v25  ;;  %658 = vmatprep.subr.mxu0 %v144_v26  ;;  %v742_v3 = vld [vmem:[#allocation2 + $0x28] ss:$16 sps:$4 sm:$0xff]   ;;  %v745_v6 = vld [vmem:[#allocation2 + $0x2c] ss:$16 sps:$4 sm:$0xff]   ;;  %v133_v11 = vld [vmem:[#allocation5 + $0x290] sm:$0xff]  ;;  %v240_v13 = vrot.slane %v740_v2, %v852_v55  ;;  %v247_v17 = vrot.slane %v744_v5, %v852_v55 }
  0x48   :  { %693 = vmatprep.subr.mxu1 %v176_v27  ;;  %659 = vmatpush3.msra.mxu0 %v128_v28  ;;  %v166_v8 = vld [vmem:[#allocation5 + $0x398] sm:$0xff]  ;;  %v165_v12 = vld [vmem:[#allocation5 + $0x390] sm:$0xff]  ;;  %v254_v14 = vrot.slane %v742_v3, %v852_v55  ;;  %v261_v18 = vrot.slane %v745_v6, %v852_v55  ;;  %v132_v19 = vld [vmem:[#allocation5 + $0x288] sm:$0xff] }
  0x49   :  { %694 = vmatpush3.msra.mxu1 %v160_v29  ;;  %660 = vmatprep.subr.mxu0 %v143_v30  ;;  %v118_v9 = vld [vmem:[#allocation5 + $0x218] sm:$0xff]  ;;  %v117_v15 = vld [vmem:[#allocation5 + $0x210] sm:$0xff]  ;;  %v164_v20 = vld [vmem:[#allocation5 + $0x388] sm:$0xff] }
  0x4a   :  { %695 = vmatprep.subr.mxu1 %v175_v31  ;;  %661 = vmatpush3.msra.mxu0 %v127_v32  ;;  %v150_v10 = vld [vmem:[#allocation5 + $0x318] sm:$0xff]  ;;  %v149_v16 = vld [vmem:[#allocation5 + $0x310] sm:$0xff]  ;;  %v116_v21 = vld [vmem:[#allocation5 + $0x208] sm:$0xff]  ;;  %v263_v25 = vcombine.high %v240_v13, %v254_v14  ;;  %v265_v27 = vcombine.high %v247_v17, %v261_v18  ;;  %v262_v28 = vcombine.low %v240_v13, %v254_v14 }
  0x4b   :  { %696 = vmatpush3.msra.mxu1 %v159_v33  ;;  %662 = vmatprep.subr.mxu0 %v142_v34  ;;  %v148_v22 = vld [vmem:[#allocation5 + $0x308] sm:$0xff]  ;;  %v131_v23 = vld [vmem:[#allocation5 + $0x280] sm:$0xff]  ;;  %v264_v29 = vcombine.low %v247_v17, %v261_v18 }
  0x4c   :  { %697 = vmatprep.subr.mxu1 %v174_v35  ;;  %663 = vmatpush3.msra.mxu0 %v126_v36  ;;  %v163_v24 = vld [vmem:[#allocation5 + $0x380] sm:$0xff] }
  0x4d   :  { %698 = vmatpush3.msra.mxu1 %v158_v37  ;;  %664 = vmatprep.subr.mxu0 %v141_v38  ;;  %v115_v26 = vld [vmem:[#allocation5 + $0x200] sm:$0xff] }
  0x4e   :  { %699 = vmatprep.subr.mxu1 %v173_v39  ;;  %665 = vmatpush3.msra.mxu0 %v125_v40  ;;  %v147_v55 = vld [vmem:[#allocation5 + $0x300] sm:$0xff] }
  0x4f   :  { %700 = vmatpush3.msra.mxu1 %v157_v41  ;;  %666 = vmatprep.subr.mxu0 %v140_v42  ;;  %v583_v34 = vld [vmem:[%s870_s2] ss:$0 sm:$0xff] }
  0x50   :  { %701 = vmatprep.subr.mxu1 %v172_v43  ;;  %667 = vmatpush3.msra.mxu0 %v124_v44 }
  0x51   :  { %702 = vmatpush3.msra.mxu1 %v156_v45  ;;  %668 = vmatprep.subr.mxu0 %v139_v46 }
  0x52   :  { %703 = vmatprep.subr.mxu1 %v171_v47  ;;  %669 = vmatpush3.msra.mxu0 %v123_v48 }
  0x53   :  { %704 = vmatpush3.msra.mxu1 %v155_v49  ;;  %670 = vmatprep.subr.mxu0 %v138_v50 }
  0x54   :  { %705 = vmatprep.subr.mxu1 %v170_v51  ;;  %671 = vmatpush3.msra.mxu0 %v122_v52 }
  0x55   :  { %706 = vmatpush3.msra.mxu1 %v154_v53  ;;  %672 = vmatprep.subr.mxu0 %v137_v54 }
  0x56   :  { %707 = vmatprep.subr.mxu1 %v169_v56  ;;  %673 = vmatpush3.msra.mxu0 %v121_v57 }
  0x57   :  { %708 = vmatpush3.msra.mxu1 %v153_v58  ;;  %674 = vmatprep.subr.mxu0 %v136_v59 }
  0x58   :  { %709 = vmatprep.subr.mxu1 %v168_v60  ;;  %675 = vmatpush3.msra.mxu0 %v120_v61 }
  0x59   :  { %710 = vmatpush3.msra.mxu1 %v152_v62  ;;  %676 = vmatprep.subr.mxu0 %v135_v63 }
  0x5a   :  { %711 = vmatprep.subr.mxu1 %v167_v0  ;;  %677 = vmatpush3.msra.mxu0 %v119_v1 }
  0x5b   :  { %712 = vmatpush3.msra.mxu1 %v151_v4  ;;  %678 = vmatprep.subr.mxu0 %v134_v7 }
  0x5c   :  { %713 = vmatprep.subr.mxu1 %v166_v8  ;;  %679 = vmatpush3.msra.mxu0 %v118_v9 }
  0x5d   :  { %714 = vmatpush3.msra.mxu1 %v150_v10  ;;  %680 = vmatprep.subr.mxu0 %v133_v11 }
  0x5e   :  { %715 = vmatprep.subr.mxu1 %v165_v12  ;;  %681 = vmatpush3.msra.mxu0 %v117_v15 }
  0x5f   :  { %716 = vmatpush3.msra.mxu1 %v149_v16  ;;  %682 = vmatprep.subr.mxu0 %v132_v19 }
  0x60   :  { %717 = vmatprep.subr.mxu1 %v164_v20  ;;  %683 = vmatpush3.msra.mxu0 %v116_v21 }
  0x61   :  { %718 = vmatpush3.msra.mxu1 %v148_v22  ;;  %684 = vmatprep.subr.mxu0 %v131_v23 }
  0x62   :  { %719 = vmatprep.subr.mxu1 %v163_v24  ;;  %685 = vmatpush3.msra.mxu0 %v115_v26 }
  0x63   :  { %478 = vmatprep.mubr.f32.mxu0 %v263_v25  ;;  %720 = vmatpush3.msra.mxu1 %v147_v55 }
  0x64   :  { %548 = vmatprep.mubr.f32.mxu1 %v265_v27  ;;  %479 = vmatmul.mubr.f32.vlgmr.msra.gmra.mxu0 %v262_v28 }
  0x65   :  { %549 = vmatmul.mubr.f32.vlgmr.msra.gmra.mxu1 %v264_v29 }
 0x102   :  { %v616_v30 = vpop.f32.mrf.mxu0 }
 0x104   :  { %v651_v31 = vpop.f32.mrf.mxu1  ;;  %v617_v32 = vpop.f32.mrf.mxu0 }
 0x105   :  { %v618_v33 = vadd.f32 %v617_v32, %v616_v30 }
 0x106   :  { %v652_v35 = vpop.f32.mrf.mxu1 }
 0x107   :  { %v341_v36 = vadd.f32 %v618_v33, %v583_v34  ;;  %v653_v37 = vadd.f32 %v652_v35, %v651_v31 }
 0x109   :  { %v411_v42 = vadd.f32 %v653_v37, %v341_v36 }
 0x124   :  { %v686_v38 = vpop.f32.mrf.mxu0 }
 0x125   :  { %v721_v39 = vpop.f32.mrf.mxu1 }
 0x126   :  { %v687_v40 = vpop.f32.mrf.mxu0 }
 0x127   :  { %v722_v41 = vpop.f32.mrf.mxu1  ;;  %v688_v43 = vadd.f32 %v687_v40, %v686_v38 }
 0x128   :  { %v723_v45 = vadd.f32 %v722_v41, %v721_v39 }
 0x129   :  { %v481_v44 = vadd.f32 %v688_v43, %v411_v42 }
 0x12b   :  { %v551_v46 = vadd.f32 %v723_v45, %v481_v44 }
 0x12d   :  { %554 = vmax.xlane.f32.xlu0 %v551_v46 }
 0x1b6   :  { %v555_v47 = vpop.xlane.xlu0 %554 }
 0x1b7   :  { %v556_v48 = vsub.f32 %v551_v46, %v555_v47 }
 0x1b9   :  { %v557_v49 = vmul.f32 1.442695, %v556_v48 }
 0x1bb   :  { %746 = vpow2.f32 %v557_v49 }
 0x1c8   :  { %v747_v50 = vpop.eup %746 }
 0x1c9   :  { %559 = vadd.xlane.f32.xlu0 %v747_v50 }
 0x252   :  { %v560_v51 = vpop.xlane.xlu0 %559 }
 0x253   :  { %748 = vrcp.f32 %v560_v51 }
 0x260   :  { %v749_v52 = vpop.eup %748 }
 0x261   :  { %v563_v53 = vmul.f32 %v749_v52, %v747_v50 }
 0x263   :  { %564 = vst [vmem:[#allocation7] sm:$0xff] %v563_v53 }
 0x264   :  { %569 = vsyncadd [#allocation4], 96  ;;  %s823_s2 = smov [#allocation7]  }
 0x265   :  { %s570_s27 = sshll.u32 %s823_s2, 4  ;;  %s571_s27 = int_to_ptr.vmem [resolvable:$true] %s570_s27 }
 0x266   :  { %s790_s28 = scalar_lea.vmem %s571_s27, 32  ;;  %s794_s29 = scalar_lea.vmem %s571_s27, 128 }
 0x267   :  { %p791_p10 = scmp.ne.s32.totalorder %s571_s27, %s790_s28  ;;  %p795_p11 = scmp.lt.s32.totalorder %s571_s27, %s571_s27 }
 0x268   :  { %p796_p12 = scmp.lt.s32.totalorder %s794_s29, %s790_s28 }
 0x26a   :  { %p797_p13 = por %p796_p12, %p795_p11 }
 0x26c   :  { %p798_p0 = pnand %p797_p13, %p791_p10 }
 0x26e   :  { %801 = shalt.err (!%p798_p0)
}
 0x26f   :  { %s824_s30 = smov 32   ;;  %s825_s4 = smov 2  }
 0x270   :  { %576 = dma.vmem_to_hbm [thread:$0]  %s571_s27, 32, %s871_s3, [#allocation4], %s824_s30, %s824_s30, %s825_s4  }
 0x271   :  { %814 = dma.done.wait [#allocation4], 128  }
 0x272   :  { %815 = vsyncadd [#allocation4], 4294967168 }
 0x273   :  { %580 = vsyncpa [#allocation3], 1 }
 0x274   :  { %581 = vsyncpa [#allocation6], 1 }
 0x275   :  { %582 = vsyncpa [#allocation4], 1 }

// kernel: tpu_custom_call.1
= control target key start
LH: loop header
LB: loop body
LE: loop exit
PB: predicated region body
PF: predicated region fallthrough
CT: control target
= control target key end

     0   :  { %8 = vsyncpa [#allocation3], 0  ;;  %s868_s0 = inlined_call_operand.hbm [shape: f32[2,1024], index: 0, kind: input, shape index: {}]   ;;  %s869_s1 = inlined_call_operand.hbm [shape: f32[1024,128], index: 1, kind: input, shape index: {}]   ;;  %s870_s2 = inlined_call_operand.vmem [shape: f32[1,128], index: 2, kind: input, shape index: {}]   ;;  %s871_s3 = inlined_call_operand.hbm [shape: f32[2,128], index: 3, kind: output, shape index: {}]  }
   0x1   :  { %9 = vsyncpa [#allocation6], 0 }
   0x2   :  { %10 = vsyncpa [#allocation4], 0 }
   0x3   :  { %15 = vsyncadd [#allocation3], 768  ;;  %s816_s12 = smov [#allocation2]  }
   0x4   :  { %s16_s13 = sshll.u32 %s816_s12, 4  ;;  %s17_s13 = int_to_ptr.vmem [resolvable:$true] %s16_s13 }
   0x5   :  { %s758_s14 = scalar_lea.vmem %s17_s13, 256  ;;  %s762_s15 = scalar_lea.vmem %s17_s13, 1024 }
   0x6   :  { %p759_p0 = scmp.ne.s32.totalorder %s17_s13, %s758_s14  ;;  %p763_p1 = scmp.lt.s32.totalorder %s17_s13, %s17_s13 }
   0x7   :  { %p764_p2 = scmp.lt.s32.totalorder %s762_s15, %s758_s14 }
   0x9   :  { %p765_p3 = por %p764_p2, %p763_p1 }
   0xb   :  { %p766_p4 = pnand %p765_p3, %p759_p0 }
   0xd   :  { %769 = shalt.err (!%p766_p4)
}
   0xe   :  { %s817_s16 = smov 256   ;;  %s818_s17 = smov 16  }
   0xf   :  { %22 = dma.hbm_to_vmem [thread:$0]  %s868_s0, 256, %s17_s13, [#allocation3], %s817_s16, %s817_s16, %s818_s17  }
  0x10   :  { %s819_s20 = smov [#allocation5]  }
  0x11   :  { %s28_s21 = sshll.u32 %s819_s20, 4  ;;  %s29_s21 = int_to_ptr.vmem [resolvable:$true] %s28_s21 }
  0x12   :  { %s778_s22 = scalar_lea.vmem %s29_s21, 16384  ;;  %p783_p6 = scmp.lt.s32.totalorder %s29_s21, %s29_s21 }
  0x13   :  { %p779_p5 = scmp.ne.s32.totalorder %s29_s21, %s778_s22  ;;  %p784_p7 = scmp.lt.s32.totalorder %s778_s22, %s778_s22 }
  0x15   :  { %p785_p8 = por %p784_p7, %p783_p6 }
  0x17   :  { %p786_p9 = pnand %p785_p8, %p779_p5 }
  0x19   :  { %789 = shalt.err (!%p786_p9)
}
  0x1a   :  { %s820_s23 = smov 128   ;;  %s821_s24 = smov 8  }
  0x1b   :  { %34 = dma.hbm_to_vmem [thread:$0]  %s869_s1, 16384, %s29_s21, [#allocation6], %s820_s23, %s820_s23, %s821_s24  }
  0x1c   :  { %810 = dma.done.wait [#allocation3], 1024  }
  0x1d   :  { %811 = vsyncadd [#allocation3], 4294966272 }
  0x1e   :  { %812 = dma.done.wait [#allocation6], 16384  }
  0x1f   :  { %813 = vsyncadd [#allocation6], 4294950912  ;;  %v82_v0 = vld [vmem:[#allocation5 + $0xf8] sm:$0xff]  ;;  %v81_v4 = vld [vmem:[#allocation5 + $0xf0] sm:$0xff]  ;;  %v822_v30 = vmov 1983009808   ;;  %v201_v32 = vlaneseq }
  0x20   :  { %v114_v1 = vld [vmem:[#allocation5 + $0x1f8] sm:$0xff]  ;;  %584 = vmatprep.subr.mxu0 %v82_v0  ;;  %v113_v5 = vld [vmem:[#allocation5 + $0x1f0] sm:$0xff]  ;;  %v80_v8 = vld [vmem:[#allocation5 + $0xe8] sm:$0xff]  ;;  %v199_v31 = vunpack.c.l.s4 %v822_v30 }
  0x21   :  { %v66_v2 = vld [vmem:[#allocation5 + $0x78] sm:$0xff]  ;;  %619 = vmatprep.subr.mxu1 %v114_v1  ;;  %v65_v6 = vld [vmem:[#allocation5 + $0x70] sm:$0xff]  ;;  %v112_v9 = vld [vmem:[#allocation5 + $0x1e8] sm:$0xff]  ;;  %v202_v42 = vshrl.u32 %v201_v32, 7 }
  0x22   :  { %v98_v3 = vld [vmem:[#allocation5 + $0x178] sm:$0xff]  ;;  %585 = vmatpush3.msra.mxu0 %v66_v2  ;;  %v97_v7 = vld [vmem:[#allocation5 + $0x170] sm:$0xff]  ;;  %v64_v10 = vld [vmem:[#allocation5 + $0x68] sm:$0xff]  ;;  %v200_v41 = vunpack.c.0.s8 %v199_v31 }
  0x23   :  { %620 = vmatpush3.msra.mxu1 %v98_v3  ;;  %586 = vmatprep.subr.mxu0 %v81_v4  ;;  %v96_v11 = vld [vmem:[#allocation5 + $0x168] sm:$0xff]  ;;  %v79_v12 = vld [vmem:[#allocation5 + $0xe0] sm:$0xff]  ;;  %v78_v16 = vld [vmem:[#allocation5 + $0xd8] sm:$0xff] }
  0x24   :  { %621 = vmatprep.subr.mxu1 %v113_v5  ;;  %587 = vmatpush3.msra.mxu0 %v65_v6  ;;  %v111_v13 = vld [vmem:[#allocation5 + $0x1e0] sm:$0xff]  ;;  %v110_v17 = vld [vmem:[#allocation5 + $0x1d8] sm:$0xff]  ;;  %v77_v20 = vld [vmem:[#allocation5 + $0xd0] sm:$0xff]  ;;  %v852_v55 = vsub.s32 %v200_v41, %v202_v42 }
  0x25   :  { %622 = vmatpush3.msra.mxu1 %v97_v7  ;;  %588 = vmatprep.subr.mxu0 %v80_v8  ;;  %v63_v14 = vld [vmem:[#allocation5 + $0x60] sm:$0xff]  ;;  %v62_v18 = vld [vmem:[#allocation5 + $0x58] sm:$0xff]  ;;  %v109_v21 = vld [vmem:[#allocation5 + $0x1d0] sm:$0xff] }
  0x26   :  { %623 = vmatprep.subr.mxu1 %v112_v9  ;;  %v95_v15 = vld [vmem:[#allocation5 + $0x160] sm:$0xff]  ;;  %589 = vmatpush3.msra.mxu0 %v64_v10  ;;  %v94_v19 = vld [vmem:[#allocation5 + $0x158] sm:$0xff]  ;;  %v61_v22 = vld [vmem:[#allocation5 + $0x50] sm:$0xff] }
  0x27   :  { %624 = vmatpush3.msra.mxu1 %v96_v11  ;;  %590 = vmatprep.subr.mxu0 %v79_v12  ;;  %v93_v23 = vld [vmem:[#allocation5 + $0x150] sm:$0xff]  ;;  %v76_v24 = vld [vmem:[#allocation5 + $0xc8] sm:$0xff]  ;;  %v75_v28 = vld [vmem:[#allocation5 + $0xc0] sm:$0xff] }
  0x28   :  { %625 = vmatprep.subr.mxu1 %v111_v13  ;;  %591 = vmatpush3.msra.mxu0 %v63_v14  ;;  %v108_v25 = vld [vmem:[#allocation5 + $0x1c8] sm:$0xff]  ;;  %v107_v29 = vld [vmem:[#allocation5 + $0x1c0] sm:$0xff]  ;;  %v74_v35 = vld [vmem:[#allocation5 + $0xb8] sm:$0xff] }
  0x29   :  { %626 = vmatpush3.msra.mxu1 %v95_v15  ;;  %592 = vmatprep.subr.mxu0 %v78_v16  ;;  %v60_v26 = vld [vmem:[#allocation5 + $0x48] sm:$0xff]  ;;  %v59_v33 = vld [vmem:[#allocation5 + $0x40] sm:$0xff]  ;;  %v106_v36 = vld [vmem:[#allocation5 + $0x1b8] sm:$0xff] }
  0x2a   :  { %627 = vmatprep.subr.mxu1 %v110_v17  ;;  %593 = vmatpush3.msra.mxu0 %v62_v18  ;;  %v92_v27 = vld [vmem:[#allocation5 + $0x148] sm:$0xff]  ;;  %v91_v34 = vld [vmem:[#allocation5 + $0x140] sm:$0xff]  ;;  %v58_v37 = vld [vmem:[#allocation5 + $0x38] sm:$0xff] }
  0x2b   :  { %628 = vmatpush3.msra.mxu1 %v94_v19  ;;  %594 = vmatprep.subr.mxu0 %v77_v20  ;;  %v90_v38 = vld [vmem:[#allocation5 + $0x138] sm:$0xff]  ;;  %v73_v39 = vld [vmem:[#allocation5 + $0xb0] sm:$0xff]  ;;  %v72_v45 = vld [vmem:[#allocation5 + $0xa8] sm:$0xff] }
  0x2c   :  { %629 = vmatprep.subr.mxu1 %v109_v21  ;;  %595 = vmatpush3.msra.mxu0 %v61_v22  ;;  %v105_v40 = vld [vmem:[#allocation5 + $0x1b0] sm:$0xff]  ;;  %v104_v46 = vld [vmem:[#allocation5 + $0x1a8] sm:$0xff]  ;;  %v71_v49 = vld [vmem:[#allocation5 + $0xa0] sm:$0xff] }
  0x2d   :  { %630 = vmatpush3.msra.mxu1 %v93_v23  ;;  %596 = vmatprep.subr.mxu0 %v76_v24  ;;  %v57_v43 = vld [vmem:[#allocation5 + $0x30] sm:$0xff]  ;;  %v56_v47 = vld [vmem:[#allocation5 + $0x28] sm:$0xff]  ;;  %v103_v50 = vld [vmem:[#allocation5 + $0x1a0] sm:$0xff] }
  0x2e   :  { %631 = vmatprep.subr.mxu1 %v108_v25  ;;  %597 = vmatpush3.msra.mxu0 %v60_v26  ;;  %v89_v44 = vld [vmem:[#allocation5 + $0x130] sm:$0xff]  ;;  %v88_v48 = vld [vmem:[#allocation5 + $0x128] sm:$0xff]  ;;  %v55_v51 = vld [vmem:[#allocation5 + $0x20] sm:$0xff] }
  0x2f   :  { %632 = vmatpush3.msra.mxu1 %v92_v27  ;;  %598 = vmatprep.subr.mxu0 %v75_v28  ;;  %v87_v52 = vld [vmem:[#allocation5 + $0x120] sm:$0xff]  ;;  %v70_v53 = vld [vmem:[#allocation5 + $0x98] sm:$0xff]  ;;  %v69_v62 = vld [vmem:[#allocation5 + $0x90] sm:$0xff] }
  0x30   :  { %633 = vmatprep.subr.mxu1 %v107_v29  ;;  %599 = vmatpush3.msra.mxu0 %v59_v33  ;;  %v102_v54 = vld [vmem:[#allocation5 + $0x198] sm:$0xff]  ;;  %v734_v57 = vld [vmem:[#allocation2] ss:$16 sps:$4 sm:$0xff]   ;;  %v738_v60 = vld [vmem:[#allocation2 + $0x4] ss:$16 sps:$4 sm:$0xff]  }
  0x31   :  { %634 = vmatpush3.msra.mxu1 %v91_v34  ;;  %600 = vmatprep.subr.mxu0 %v74_v35  ;;  %v54_v56 = vld [vmem:[#allocation5 + $0x18] sm:$0xff]  ;;  %v736_v58 = vld [vmem:[#allocation2 + $0x20] ss:$16 sps:$4 sm:$0xff]   ;;  %v739_v61 = vld [vmem:[#allocation2 + $0x24] ss:$16 sps:$4 sm:$0xff]   ;;  %v204_v0 = vrot.slane %v734_v57, %v852_v55  ;;  %v211_v6 = vrot.slane %v738_v60, %v852_v55 }
  0x32   :  { %635 = vmatprep.subr.mxu1 %v106_v36  ;;  %601 = vmatpush3.msra.mxu0 %v58_v37  ;;  %v86_v59 = vld [vmem:[#allocation5 + $0x118] sm:$0xff]  ;;  %v101_v63 = vld [vmem:[#allocation5 + $0x190] sm:$0xff]  ;;  %v218_v1 = vrot.slane %v736_v58, %v852_v55  ;;  %v68_v4 = vld [vmem:[#allocation5 + $0x88] sm:$0xff]  ;;  %v225_v7 = vrot.slane %v739_v61, %v852_v55 }
  0x33   :  { %636 = vmatpush3.msra.mxu1 %v90_v38  ;;  %602 = vmatprep.subr.mxu0 %v73_v39  ;;  %v53_v2 = vld [vmem:[#allocation5 + $0x10] sm:$0xff]  ;;  %v100_v5 = vld [vmem:[#allocation5 + $0x188] sm:$0xff]  ;;  %v67_v10 = vld [vmem:[#allocation5 + $0x80] sm:$0xff] }
  0x34   :  { %637 = vmatprep.subr.mxu1 %v105_v40  ;;  %603 = vmatpush3.msra.mxu0 %v57_v43  ;;  %v85_v3 = vld [vmem:[#allocation5 + $0x110] sm:$0xff]  ;;  %v52_v8 = vld [vmem:[#allocation5 + $0x8] sm:$0xff]  ;;  %v99_v11 = vld [vmem:[#allocation5 + $0x180] sm:$0xff]  ;;  %v227_v12 = vcombine.high %v204_v0, %v218_v1  ;;  %v226_v14 = vcombine.low %v204_v0, %v218_v1  ;;  %v229_v16 = vcombine.high %v211_v6, %v225_v7 }
  0x35   :  { %638 = vmatpush3.msra.mxu1 %v89_v44  ;;  %604 = vmatprep.subr.mxu0 %v72_v45  ;;  %v84_v9 = vld [vmem:[#allocation5 + $0x108] sm:$0xff]  ;;  %v51_v13 = vld [vmem:[#allocation5] sm:$0xff]  ;;  %v146_v17 = vld [vmem:[#allocation5 + $0x2f8] sm:$0xff]  ;;  %v228_v18 = vcombine.low %v211_v6, %v225_v7 }
  0x36   :  { %639 = vmatprep.subr.mxu1 %v104_v46  ;;  %605 = vmatpush3.msra.mxu0 %v56_v47  ;;  %v83_v15 = vld [vmem:[#allocation5 + $0x100] sm:$0xff]  ;;  %v178_v19 = vld [vmem:[#allocation5 + $0x3f8] sm:$0xff]  ;;  %v145_v22 = vld [vmem:[#allocation5 + $0x2f0] sm:$0xff] }
  0x37   :  { %640 = vmatpush3.msra.mxu1 %v88_v48  ;;  %606 = vmatprep.subr.mxu0 %v71_v49  ;;  %v130_v20 = vld [vmem:[#allocation5 + $0x278] sm:$0xff]  ;;  %v177_v23 = vld [vmem:[#allocation5 + $0x3f0] sm:$0xff]  ;;  %v144_v26 = vld [vmem:[#allocation5 + $0x2e8] sm:$0xff] }
  0x38   :  { %641 = vmatprep.subr.mxu1 %v103_v50  ;;  %607 = vmatpush3.msra.mxu0 %v55_v51  ;;  %v162_v21 = vld [vmem:[#allocation5 + $0x378] sm:$0xff]  ;;  %v129_v24 = vld [vmem:[#allocation5 + $0x270] sm:$0xff]  ;;  %v176_v27 = vld [vmem:[#allocation5 + $0x3e8] sm:$0xff] }
  0x39   :  { %642 = vmatpush3.msra.mxu1 %v87_v52  ;;  %608 = vmatprep.subr.mxu0 %v70_v53  ;;  %v161_v25 = vld [vmem:[#allocation5 + $0x370] sm:$0xff]  ;;  %v128_v28 = vld [vmem:[#allocation5 + $0x268] sm:$0xff]  ;;  %v143_v30 = vld [vmem:[#allocation5 + $0x2e0] sm:$0xff] }
  0x3a   :  { %643 = vmatprep.subr.mxu1 %v102_v54  ;;  %609 = vmatpush3.msra.mxu0 %v54_v56  ;;  %v160_v29 = vld [vmem:[#allocation5 + $0x368] sm:$0xff]  ;;  %v175_v31 = vld [vmem:[#allocation5 + $0x3e0] sm:$0xff]  ;;  %v142_v34 = vld [vmem:[#allocation5 + $0x2d8] sm:$0xff] }
  0x3b   :  { %644 = vmatpush3.msra.mxu1 %v86_v59  ;;  %610 = vmatprep.subr.mxu0 %v69_v62  ;;  %v127_v32 = vld [vmem:[#allocation5 + $0x260] sm:$0xff]  ;;  %v174_v35 = vld [vmem:[#allocation5 + $0x3d8] sm:$0xff]  ;;  %v141_v38 = vld [vmem:[#allocation5 + $0x2d0] sm:$0xff] }
  0x3c   :  { %645 = vmatprep.subr.mxu1 %v101_v63  ;;  %611 = vmatpush3.msra.mxu0 %v53_v2  ;;  %v159_v33 = vld [vmem:[#allocation5 + $0x360] sm:$0xff]  ;;  %v126_v36 = vld [vmem:[#allocation5 + $0x258] sm:$0xff]  ;;  %v173_v39 = vld [vmem:[#allocation5 + $0x3d0] sm:$0xff] }
  0x3d   :  { %646 = vmatpush3.msra.mxu1 %v85_v3  ;;  %612 = vmatprep.subr.mxu0 %v68_v4  ;;  %v158_v37 = vld [vmem:[#allocation5 + $0x358] sm:$0xff]  ;;  %v125_v40 = vld [vmem:[#allocation5 + $0x250] sm:$0xff]  ;;  %v140_v42 = vld [vmem:[#allocation5 + $0x2c8] sm:$0xff] }
  0x3e   :  { %647 = vmatprep.subr.mxu1 %v100_v5  ;;  %613 = vmatpush3.msra.mxu0 %v52_v8  ;;  %v157_v41 = vld [vmem:[#allocation5 + $0x350] sm:$0xff]  ;;  %v172_v43 = vld [vmem:[#allocation5 + $0x3c8] sm:$0xff]  ;;  %v139_v46 = vld [vmem:[#allocation5 + $0x2c0] sm:$0xff] }
  0x3f   :  { %648 = vmatpush3.msra.mxu1 %v84_v9  ;;  %614 = vmatprep.subr.mxu0 %v67_v10  ;;  %v124_v44 = vld [vmem:[#allocation5 + $0x248] sm:$0xff]  ;;  %v171_v47 = vld [vmem:[#allocation5 + $0x3c0] sm:$0xff]  ;;  %v138_v50 = vld [vmem:[#allocation5 + $0x2b8] sm:$0xff] }
  0x40   :  { %649 = vmatprep.subr.mxu1 %v99_v11  ;;  %615 = vmatpush3.msra.mxu0 %v51_v13  ;;  %v156_v45 = vld [vmem:[#allocation5 + $0x348] sm:$0xff]  ;;  %v123_v48 = vld [vmem:[#allocation5 + $0x240] sm:$0xff]  ;;  %v170_v51 = vld [vmem:[#allocation5 + $0x3b8] sm:$0xff] }
  0x41   :  { %338 = vmatprep.mubr.f32.mxu0 %v227_v12  ;;  %650 = vmatpush3.msra.mxu1 %v83_v15  ;;  %v155_v49 = vld [vmem:[#allocation5 + $0x340] sm:$0xff]  ;;  %v122_v52 = vld [vmem:[#allocation5 + $0x238] sm:$0xff]  ;;  %v137_v54 = vld [vmem:[#allocation5 + $0x2b0] sm:$0xff] }
  0x42   :  { %339 = vmatmul.mubr.f32.vlgmr.msra.gmra.mxu0 %v226_v14  ;;  %408 = vmatprep.mubr.f32.mxu1 %v229_v16  ;;  %v154_v53 = vld [vmem:[#allocation5 + $0x338] sm:$0xff]  ;;  %v169_v56 = vld [vmem:[#allocation5 + $0x3b0] sm:$0xff]  ;;  %v136_v59 = vld [vmem:[#allocation5 + $0x2a8] sm:$0xff] }
  0x43   :  { %654 = vmatprep.subr.mxu0 %v146_v17  ;;  %689 = vmatprep.subr.mxu1 %v178_v19  ;;  %v121_v57 = vld [vmem:[#allocation5 + $0x230] sm:$0xff]  ;;  %v168_v60 = vld [vmem:[#allocation5 + $0x3a8] sm:$0xff]  ;;  %v135_v63 = vld [vmem:[#allocation5 + $0x2a0] sm:$0xff] }
  0x44   :  { %409 = vmatmul.mubr.f32.vlgmr.msra.gmra.mxu1 %v228_v18  ;;  %655 = vmatpush3.msra.mxu0 %v130_v20  ;;  %v153_v58 = vld [vmem:[#allocation5 + $0x330] sm:$0xff]  ;;  %v120_v61 = vld [vmem:[#allocation5 + $0x228] sm:$0xff]  ;;  %v167_v0 = vld [vmem:[#allocation5 + $0x3a0] sm:$0xff] }
  0x45   :  { %690 = vmatpush3.msra.mxu1 %v162_v21  ;;  %656 = vmatprep.subr.mxu0 %v145_v22  ;;  %v152_v62 = vld [vmem:[#allocation5 + $0x328] sm:$0xff]  ;;  %v119_v1 = vld [vmem:[#allocation5 + $0x220] sm:$0xff]  ;;  %v134_v7 = vld [vmem:[#allocation5 + $0x298] sm:$0xff] }
  0x46   :  { %691 = vmatprep.subr.mxu1 %v177_v23  ;;  %657 = vmatpush3.msra.mxu0 %v129_v24  ;;  %v740_v2 = vld [vmem:[#allocation2 + $0x8] ss:$16 sps:$4 sm:$0xff]   ;;  %v151_v4 = vld [vmem:[#allocation5 + $0x320] sm:$0xff]  ;;  %v744_v5 = vld [vmem:[#allocation2 + $0xc] ss:$16 sps:$4 sm:$0xff]  }
  0x47   :  { %692 = vmatpush3.msra.mxu1 %v161_v25  ;;  %658 = vmatprep.subr.mxu0 %v144_v26  ;;  %v742_v3 = vld [vmem:[#allocation2 + $0x28] ss:$16 sps:$4 sm:$0xff]   ;;  %v745_v6 = vld [vmem:[#allocation2 + $0x2c] ss:$16 sps:$4 sm:$0xff]   ;;  %v133_v11 = vld [vmem:[#allocation5 + $0x290] sm:$0xff]  ;;  %v240_v13 = vrot.slane %v740_v2, %v852_v55  ;;  %v247_v17 = vrot.slane %v744_v5, %v852_v55 }
  0x48   :  { %693 = vmatprep.subr.mxu1 %v176_v27  ;;  %659 = vmatpush3.msra.mxu0 %v128_v28  ;;  %v166_v8 = vld [vmem:[#allocation5 + $0x398] sm:$0xff]  ;;  %v165_v12 = vld [vmem:[#allocation5 + $0x390] sm:$0xff]  ;;  %v254_v14 = vrot.slane %v742_v3, %v852_v55  ;;  %v261_v18 = vrot.slane %v745_v6, %v852_v55  ;;  %v132_v19 = vld [vmem:[#allocation5 + $0x288] sm:$0xff] }
  0x49   :  { %694 = vmatpush3.msra.mxu1 %v160_v29  ;;  %660 = vmatprep.subr.mxu0 %v143_v30  ;;  %v118_v9 = vld [vmem:[#allocation5 + $0x218] sm:$0xff]  ;;  %v117_v15 = vld [vmem:[#allocation5 + $0x210] sm:$0xff]  ;;  %v164_v20 = vld [vmem:[#allocation5 + $0x388] sm:$0xff] }
  0x4a   :  { %695 = vmatprep.subr.mxu1 %v175_v31  ;;  %661 = vmatpush3.msra.mxu0 %v127_v32  ;;  %v150_v10 = vld [vmem:[#allocation5 + $0x318] sm:$0xff]  ;;  %v149_v16 = vld [vmem:[#allocation5 + $0x310] sm:$0xff]  ;;  %v116_v21 = vld [vmem:[#allocation5 + $0x208] sm:$0xff]  ;;  %v263_v25 = vcombine.high %v240_v13, %v254_v14  ;;  %v265_v27 = vcombine.high %v247_v17, %v261_v18  ;;  %v262_v28 = vcombine.low %v240_v13, %v254_v14 }
  0x4b   :  { %696 = vmatpush3.msra.mxu1 %v159_v33  ;;  %662 = vmatprep.subr.mxu0 %v142_v34  ;;  %v148_v22 = vld [vmem:[#allocation5 + $0x308] sm:$0xff]  ;;  %v131_v23 = vld [vmem:[#allocation5 + $0x280] sm:$0xff]  ;;  %v264_v29 = vcombine.low %v247_v17, %v261_v18 }
  0x4c   :  { %697 = vmatprep.subr.mxu1 %v174_v35  ;;  %663 = vmatpush3.msra.mxu0 %v126_v36  ;;  %v163_v24 = vld [vmem:[#allocation5 + $0x380] sm:$0xff] }
  0x4d   :  { %698 = vmatpush3.msra.mxu1 %v158_v37  ;;  %664 = vmatprep.subr.mxu0 %v141_v38  ;;  %v115_v26 = vld [vmem:[#allocation5 + $0x200] sm:$0xff] }
  0x4e   :  { %699 = vmatprep.subr.mxu1 %v173_v39  ;;  %665 = vmatpush3.msra.mxu0 %v125_v40  ;;  %v147_v55 = vld [vmem:[#allocation5 + $0x300] sm:$0xff] }
  0x4f   :  { %700 = vmatpush3.msra.mxu1 %v157_v41  ;;  %666 = vmatprep.subr.mxu0 %v140_v42  ;;  %v583_v34 = vld [vmem:[%s870_s2] ss:$0 sm:$0xff] }
  0x50   :  { %701 = vmatprep.subr.mxu1 %v172_v43  ;;  %667 = vmatpush3.msra.mxu0 %v124_v44 }
  0x51   :  { %702 = vmatpush3.msra.mxu1 %v156_v45  ;;  %668 = vmatprep.subr.mxu0 %v139_v46 }
  0x52   :  { %703 = vmatprep.subr.mxu1 %v171_v47  ;;  %669 = vmatpush3.msra.mxu0 %v123_v48 }
  0x53   :  { %704 = vmatpush3.msra.mxu1 %v155_v49  ;;  %670 = vmatprep.subr.mxu0 %v138_v50 }
  0x54   :  { %705 = vmatprep.subr.mxu1 %v170_v51  ;;  %671 = vmatpush3.msra.mxu0 %v122_v52 }
  0x55   :  { %706 = vmatpush3.msra.mxu1 %v154_v53  ;;  %672 = vmatprep.subr.mxu0 %v137_v54 }
  0x56   :  { %707 = vmatprep.subr.mxu1 %v169_v56  ;;  %673 = vmatpush3.msra.mxu0 %v121_v57 }
  0x57   :  { %708 = vmatpush3.msra.mxu1 %v153_v58  ;;  %674 = vmatprep.subr.mxu0 %v136_v59 }
  0x58   :  { %709 = vmatprep.subr.mxu1 %v168_v60  ;;  %675 = vmatpush3.msra.mxu0 %v120_v61 }
  0x59   :  { %710 = vmatpush3.msra.mxu1 %v152_v62  ;;  %676 = vmatprep.subr.mxu0 %v135_v63 }
  0x5a   :  { %711 = vmatprep.subr.mxu1 %v167_v0  ;;  %677 = vmatpush3.msra.mxu0 %v119_v1 }
  0x5b   :  { %712 = vmatpush3.msra.mxu1 %v151_v4  ;;  %678 = vmatprep.subr.mxu0 %v134_v7 }
  0x5c   :  { %713 = vmatprep.subr.mxu1 %v166_v8  ;;  %679 = vmatpush3.msra.mxu0 %v118_v9 }
  0x5d   :  { %714 = vmatpush3.msra.mxu1 %v150_v10  ;;  %680 = vmatprep.subr.mxu0 %v133_v11 }
  0x5e   :  { %715 = vmatprep.subr.mxu1 %v165_v12  ;;  %681 = vmatpush3.msra.mxu0 %v117_v15 }
  0x5f   :  { %716 = vmatpush3.msra.mxu1 %v149_v16  ;;  %682 = vmatprep.subr.mxu0 %v132_v19 }
  0x60   :  { %717 = vmatprep.subr.mxu1 %v164_v20  ;;  %683 = vmatpush3.msra.mxu0 %v116_v21 }
  0x61   :  { %718 = vmatpush3.msra.mxu1 %v148_v22  ;;  %684 = vmatprep.subr.mxu0 %v131_v23 }
  0x62   :  { %719 = vmatprep.subr.mxu1 %v163_v24  ;;  %685 = vmatpush3.msra.mxu0 %v115_v26 }
  0x63   :  { %478 = vmatprep.mubr.f32.mxu0 %v263_v25  ;;  %720 = vmatpush3.msra.mxu1 %v147_v55 }
  0x64   :  { %548 = vmatprep.mubr.f32.mxu1 %v265_v27  ;;  %479 = vmatmul.mubr.f32.vlgmr.msra.gmra.mxu0 %v262_v28 }
  0x65   :  { %549 = vmatmul.mubr.f32.vlgmr.msra.gmra.mxu1 %v264_v29 }
 0x102   :  { %v616_v30 = vpop.f32.mrf.mxu0 }
 0x104   :  { %v651_v31 = vpop.f32.mrf.mxu1  ;;  %v617_v32 = vpop.f32.mrf.mxu0 }
 0x105   :  { %v618_v33 = vadd.f32 %v617_v32, %v616_v30 }
 0x106   :  { %v652_v35 = vpop.f32.mrf.mxu1 }
 0x107   :  { %v341_v36 = vadd.f32 %v618_v33, %v583_v34  ;;  %v653_v37 = vadd.f32 %v652_v35, %v651_v31 }
 0x109   :  { %v411_v42 = vadd.f32 %v653_v37, %v341_v36 }
 0x124   :  { %v686_v38 = vpop.f32.mrf.mxu0 }
 0x125   :  { %v721_v39 = vpop.f32.mrf.mxu1 }
 0x126   :  { %v687_v40 = vpop.f32.mrf.mxu0 }
 0x127   :  { %v722_v41 = vpop.f32.mrf.mxu1  ;;  %v688_v43 = vadd.f32 %v687_v40, %v686_v38 }
 0x128   :  { %v723_v45 = vadd.f32 %v722_v41, %v721_v39 }
 0x129   :  { %v481_v44 = vadd.f32 %v688_v43, %v411_v42 }
 0x12b   :  { %v551_v46 = vadd.f32 %v723_v45, %v481_v44 }
 0x12d   :  { %554 = vmax.xlane.f32.xlu0 %v551_v46 }
 0x1b6   :  { %v555_v47 = vpop.xlane.xlu0 %554 }
 0x1b7   :  { %v556_v48 = vsub.f32 %v551_v46, %v555_v47 }
 0x1b9   :  { %v557_v49 = vmul.f32 1.442695, %v556_v48 }
 0x1bb   :  { %746 = vpow2.f32 %v557_v49 }
 0x1c8   :  { %v747_v50 = vpop.eup %746 }
 0x1c9   :  { %559 = vadd.xlane.f32.xlu0 %v747_v50 }
 0x252   :  { %v560_v51 = vpop.xlane.xlu0 %559 }
 0x253   :  { %748 = vrcp.f32 %v560_v51 }
 0x260   :  { %v749_v52 = vpop.eup %748 }
 0x261   :  { %v563_v53 = vmul.f32 %v749_v52, %v747_v50 }
 0x263   :  { %564 = vst [vmem:[#allocation7] sm:$0xff] %v563_v53 }
 0x264   :  { %569 = vsyncadd [#allocation4], 96  ;;  %s823_s2 = smov [#allocation7]  }
 0x265   :  { %s570_s27 = sshll.u32 %s823_s2, 4  ;;  %s571_s27 = int_to_ptr.vmem [resolvable:$true] %s570_s27 }
 0x266   :  { %s790_s28 = scalar_lea.vmem %s571_s27, 32  ;;  %s794_s29 = scalar_lea.vmem %s571_s27, 128 }
 0x267   :  { %p791_p10 = scmp.ne.s32.totalorder %s571_s27, %s790_s28  ;;  %p795_p11 = scmp.lt.s32.totalorder %s571_s27, %s571_s27 }
 0x268   :  { %p796_p12 = scmp.lt.s32.totalorder %s794_s29, %s790_s28 }
 0x26a   :  { %p797_p13 = por %p796_p12, %p795_p11 }
 0x26c   :  { %p798_p0 = pnand %p797_p13, %p791_p10 }
 0x26e   :  { %801 = shalt.err (!%p798_p0)
}
 0x26f   :  { %s824_s30 = smov 32   ;;  %s825_s4 = smov 2  }
 0x270   :  { %576 = dma.vmem_to_hbm [thread:$0]  %s571_s27, 32, %s871_s3, [#allocation4], %s824_s30, %s824_s30, %s825_s4  }
 0x271   :  { %814 = dma.done.wait [#allocation4], 128  }
 0x272   :  { %815 = vsyncadd [#allocation4], 4294967168 }
 0x273   :  { %580 = vsyncpa [#allocation3], 1 }
 0x274   :  { %581 = vsyncpa [#allocation6], 1 }
 0x275   :  { %582 = vsyncpa [#allocation4], 1 }

</bundles_post_ra>
